<compile_context>
chip_gen: v6e
topology: v6e:2x2x1
jax: 0.10.0
libtpu: 0.0.40
codegen_flags: <defaults>
</compile_context>

<pallas_src>
import functools

import jax
import jax.numpy as jnp
from jax.experimental import pallas as pl
from jax.experimental.pallas import tpu as pltpu


def _round_up(x, m):
    return ((int(x) + m - 1) // m) * m


# ----------------------------- Pallas kernel ------------------------------ #

def _warp_kernel(t_ref, coords_ref, src_ref, out_ref, *,
                 C, P, K, Pc, contract_x, compute_dtype):
    """One (batch, output-pixel-tile) grid step.

    t_ref:      SMEM (B, 6) scalar prefetch; row b = [t00,t01,t02,t10,t11,t12] with
                [xs, ys] = T @ [xd, yd, 1] mapping dst pixel -> src pixel.
    coords_ref: VMEM (2, TN) dst pixel coords for this tile (row 0 = x, row 1 = y).
    src_ref:    VMEM (1, P*C, K) full source of the current batch element, laid out
                (p, c, k) with k the MXU-contracted spatial axis, already compute_dtype.
    out_ref:    VMEM (1, C, TN) output tile (f32).
    """
    b = pl.program_id(0)
    t00 = t_ref[b, 0]
    t01 = t_ref[b, 1]
    t02 = t_ref[b, 2]
    t10 = t_ref[b, 3]
    t11 = t_ref[b, 4]
    t12 = t_ref[b, 5]

    xd = coords_ref[0:1, :]                       # (1, TN)
    yd = coords_ref[1:2, :]                       # (1, TN)

    # Source (sample) coordinates in pixel space.
    xs = t00 * xd + t01 * yd + t02                # (1, TN)
    ys = t10 * xd + t11 * yd + t12

    # Coordinate along the MXU-contracted axis (length K) vs the VPU-reduced axis (P).
    ks = xs if contract_x else ys
    ps = ys if contract_x else xs

    tn = xs.shape[-1]
    ik = jax.lax.broadcasted_iota(jnp.int32, (K, tn), 0).astype(jnp.float32)
    ip = jax.lax.broadcasted_iota(jnp.int32, (P, tn), 0).astype(jnp.float32)
    # Tent-form bilinear corner weights (== floor/frac form, fewer ops, no int cast).
    # Out-of-range sample coords never overlap an in-range index -> zero weight, which
    # implements padding_mode='zeros' for free.
    ak = jnp.maximum(1.0 - jnp.abs(ik - ks), 0.0).astype(compute_dtype)   # (K, TN)
    ap = jnp.maximum(1.0 - jnp.abs(ip - ps), 0.0)                         # (P, TN) f32

    # Stage 1 (MXU) + stage 2 (VPU), chunked over the non-contracted spatial axis so the
    # f32 intermediate is at most (Pc*C, TN)  (v7x 64 MiB VMEM budget).
    acc = jnp.zeros((C, tn), jnp.float32)
    for p0 in range(0, P, Pc):
        pc = min(Pc, P - p0)
        blk = src_ref[0, p0 * C:(p0 + pc) * C, :]                          # (pc*C, K)
        g = jnp.dot(blk, ak, preferred_element_type=jnp.float32)           # (pc*C, TN)
        acc = acc + jnp.sum(g.reshape(pc, C, tn) * ap[p0:p0 + pc, None, :], axis=0)
    out_ref[0] = acc.astype(out_ref.dtype)


# ------------------------------- wrapper ----------------------------------- #

def _choose_p_chunk(C, P, TN, max_g_bytes=8 << 20):
    """Chunk size over the non-contracted spatial axis, capping the f32 MXU output."""
    if C * P * TN * 4 <= max_g_bytes:
        return P
    pc = max(1, max_g_bytes // (C * TN * 4))
    pc = max(pc, pl.cdiv(256, C))     # keep MXU M = C*Pc reasonably large
    pc = _round_up(pc, 8)             # sublane-aligned chunk boundaries
    return min(pc, P)


def warp_affine_pallas(src, inv_mats, *, tile_n=512, compute_dtype=jnp.bfloat16,
                       p_chunk=None):
    """src: (B, C, H, W) float32. inv_mats: (B, 2, 3) float32 (dst px -> src px).

    compute_dtype=jnp.bfloat16 (default) uses the bf16-native MXU path (src + K-axis
    weights in bf16, f32 accumulation, f32 P-axis weights); compute_dtype=jnp.float32
    keeps bit-exact identity warps.
    """
    B, C, H, W = src.shape
    HW = H * W

    # Lane-dense output tile (multiple of 128); don't over-pad tiny images; on v7x the
    # two TensorCores split the parallel grid, so avoid a 1-step grid when possible.
    TN = max(128, _round_up(int(tile_n), 128))
    TN = min(TN, _round_up(HW, 128))
    if B * pl.cdiv(HW, TN) < 2 and HW > 128:
        TN = max(128, _round_up(pl.cdiv(HW, 2), 128))
    num_tiles = pl.cdiv(HW, TN)
    HW_pad = num_tiles * TN

    # MXU contraction axis = larger spatial dim; source laid out (B, P, C, K) then
    # flattened, so a P-chunk is a contiguous row slice of the (P*C, K) block.
    contract_x = W >= H
    if contract_x:
        P, K = H, W
        src_pck = jnp.transpose(src, (0, 2, 1, 3))        # (B, H, C, W)
    else:
        P, K = W, H
        src_pck = jnp.transpose(src, (0, 3, 1, 2))        # (B, W, C, H)
    # Cast ONCE in HBM (hoisted out of the kernel): halves DMA + resident VMEM on bf16.
    src2d = src_pck.reshape(B, P * C, K).astype(compute_dtype)
    t = inv_mats.reshape(B, 6).astype(jnp.float32)

    Pc = int(p_chunk) if p_chunk is not None else _choose_p_chunk(C, P, TN)
    Pc = max(1, min(Pc, P))

    # Grid-invariant destination pixel coordinates, precomputed once.  Padded-tail
    # pixels (HW..HW_pad) yield finite garbage and are sliced off below.
    o = jnp.arange(HW_pad, dtype=jnp.int32)
    coords = jnp.stack([(o % W).astype(jnp.float32),
                        (o // W).astype(jnp.float32)], axis=0)   # (2, HW_pad)

    kernel = functools.partial(_warp_kernel, C=C, P=P, K=K, Pc=Pc,
                               contract_x=contract_x, compute_dtype=compute_dtype)

    itemsize = jnp.dtype(compute_dtype).itemsize
    src_block_bytes = P * C * K * itemsize
    out_block_bytes = C * TN * 4
    coords_block_bytes = 2 * TN * 4
    g_bytes = Pc * C * TN * 4
    w_bytes = K * TN * (4 + itemsize) + P * TN * 4
    acc_bytes = C * TN * 4

    # Single-buffer the src block only when it is revisited across the inner tile axis
    # (its block index is constant in j); otherwise double buffering overlaps batches.
    want_single_buffer_src = num_tiles > 1

    def _run(single_buffer_src):
        src_bufs = 1 if single_buffer_src else 2
        needed = (src_bufs * src_block_bytes + 2 * (out_block_bytes + coords_block_bytes)
                  + g_bytes + w_bytes + acc_bytes)
        vmem_limit = int(min(max(int(needed * 1.5) + (4 << 20), 32 << 20), 64 << 20))
        src_spec_kwargs = {"pipeline_mode": pl.Buffered(1)} if single_buffer_src else {}
        return pl.pallas_call(
            kernel,
            out_shape=jax.ShapeDtypeStruct((B, C, HW_pad), src.dtype),
            grid_spec=pltpu.PrefetchScalarGridSpec(
                num_scalar_prefetch=1,
                grid=(B, num_tiles),           # keep B OUTER: src DMA'd once per image
                in_specs=[
                    pl.BlockSpec((2, TN), lambda b, j, t: (0, j)),
                    pl.BlockSpec((1, P * C, K), lambda b, j, t: (b, 0, 0),
                                 **src_spec_kwargs),
                ],
                out_specs=pl.BlockSpec((1, C, TN), lambda b, j, t: (b, 0, j)),
            ),
            compiler_params=pltpu.CompilerParams(
                dimension_semantics=("parallel", "parallel"),
                vmem_limit_bytes=vmem_limit,
            ),
        )(t, coords, src2d)

    if want_single_buffer_src:
        try:
            out = _run(True)
        except Exception:   # pipeline_mode=pl.Buffered(1) unsupported -> default buffering
            out = _run(False)
    else:
        out = _run(False)
    return out[:, :, :HW].reshape(B, C, H, W)


# ------------------------ affine matrix construction ----------------------- #
# (glue, plain JAX — mirrors kornia's get_rotation_matrix2d / get_affine_matrix2d)

def _angle_to_rotation_matrix(angle_deg):
    ang = jnp.deg2rad(angle_deg.astype(jnp.float32))
    c, s = jnp.cos(ang), jnp.sin(ang)
    row0 = jnp.stack([c, s], axis=-1)
    row1 = jnp.stack([-s, c], axis=-1)
    return jnp.stack([row0, row1], axis=-2)  # (B, 2, 2)


def _get_rotation_matrix2d_3x3(center, angle_deg, scale):
    B = center.shape[0]
    eye = jnp.broadcast_to(jnp.eye(3, dtype=jnp.float32), (B, 3, 3))
    shift = eye.at[:, :2, 2].set(center)
    shift_inv = eye.at[:, :2, 2].set(-center)
    scale_m = eye.at[:, 0, 0].set(scale[:, 0]).at[:, 1, 1].set(scale[:, 1])
    rot = eye.at[:, :2, :2].set(_angle_to_rotation_matrix(angle_deg))
    return shift @ rot @ scale_m @ shift_inv  # (B, 3, 3)


def _get_affine_matrix2d(translations, center, scale, angle_deg):
    # kornia: get_rotation_matrix2d(center, -angle, scale); then add translation.
    M = _get_rotation_matrix2d_3x3(center, -angle_deg, scale)
    M = M.at[:, :2, 2].add(translations)
    return M  # (B, 3, 3), maps src pixel coords -> dst pixel coords


def _invert_affine_2x3(M):
    """Closed-form inverse of (B, 3, 3) affine matrices (last row [0,0,1]) -> (B, 2, 3)."""
    a, b_, tx = M[:, 0, 0], M[:, 0, 1], M[:, 0, 2]
    c, d, ty = M[:, 1, 0], M[:, 1, 1], M[:, 1, 2]
    inv_det = 1.0 / (a * d - b_ * c)
    ia = d * inv_det
    ib = -b_ * inv_det
    ic = -c * inv_det
    id_ = a * inv_det
    itx = -(ia * tx + ib * ty)
    ity = -(ic * tx + id_ * ty)
    row0 = jnp.stack([ia, ib, itx], axis=-1)
    row1 = jnp.stack([ic, id_, ity], axis=-1)
    return jnp.stack([row0, row1], axis=-2)  # (B, 2, 3), maps dst px -> src px


# --------------------------------- module ---------------------------------- #

class Affine:
    """JAX/Pallas port of kornia Affine (bilinear, zeros padding, align_corners=True)."""

    def __init__(self, angle=None, translation=None, scale_factor=None, shear=None,
                 center=None, mode='bilinear', padding_mode='zeros', align_corners=True,
                 compute_dtype=jnp.bfloat16, tile_n=512):
        batch_sizes = [a.shape[0] for a in (angle, translation, scale_factor, shear)
                       if a is not None]
        if not batch_sizes:
            raise RuntimeError("Affine was created without any affine parameter.")
        batch_size = batch_sizes[0]
        if not all(b == batch_size for b in batch_sizes[1:]):
            raise RuntimeError(f"Batch size mismatch: {batch_sizes}")
        if angle is None:
            angle = jnp.zeros((batch_size,), jnp.float32)
        if translation is None:
            translation = jnp.zeros((batch_size, 2), jnp.float32)
        if scale_factor is None:
            scale_factor = jnp.ones((batch_size, 2), jnp.float32)
        self.angle = angle.astype(jnp.float32)
        self.translation = translation.astype(jnp.float32)
        self.scale_factor = scale_factor.astype(jnp.float32)
        # TODO(synk): shear branch (get_shear_matrix2d) and mode/padding variants other
        # than bilinear/zeros/align_corners=True are not wired into the Pallas kernel.
        self.shear = shear
        self.center = center
        self.compute_dtype = compute_dtype
        self.tile_n = tile_n

    def __call__(self, x):
        B, C, H, W = x.shape
        if self.center is None:
            center = jnp.broadcast_to(
                jnp.array([(W - 1) / 2.0, (H - 1) / 2.0], jnp.float32), (B, 2))
        else:
            center = self.center.astype(jnp.float32)
        # forward passes -angle; get_affine_matrix2d negates again internally.
        M = _get_affine_matrix2d(self.translation, center, self.scale_factor, -self.angle)
        T = _invert_affine_2x3(M)  # dst px -> src px (align_corners=True)
        return warp_affine_pallas(x, T, tile_n=self.tile_n,
                                  compute_dtype=self.compute_dtype)


# ------------------------- pure-JAX reference (test) ----------------------- #

def _warp_affine_reference(src, T):
    """Direct bilinear warp with zeros padding, pixel-space dst->src transform T."""
    B, C, H, W = src.shape
    xd = jnp.arange(W, dtype=jnp.float32)[None, :]
    yd = jnp.arange(H, dtype=jnp.float32)[:, None]

    def one(img, t):
        xs = t[0, 0] * xd + t[0, 1] * yd + t[0, 2]
        ys = t[1, 0] * xd + t[1, 1] * yd + t[1, 2]
        x0 = jnp.floor(xs)
        y0 = jnp.floor(ys)
        wx1 = xs - x0
        wx0 = 1.0 - wx1
        wy1 = ys - y0
        wy0 = 1.0 - wy1

        def corner(xc, yc, w):
            valid = (xc >= 0) & (xc <= W - 1) & (yc >= 0) & (yc <= H - 1)
            xi = jnp.clip(xc, 0, W - 1).astype(jnp.int32)
            yi = jnp.clip(yc, 0, H - 1).astype(jnp.int32)
            vals = img[:, yi, xi]                                # (C, H, W)
            return vals * jnp.where(valid, w, 0.0)[None]

        return (corner(x0, y0, wx0 * wy0) + corner(x0 + 1.0, y0, wx1 * wy0)
                + corner(x0, y0 + 1.0, wx0 * wy1) + corner(x0 + 1.0, y0 + 1.0, wx1 * wy1))

    return jax.vmap(one)(src, T)


# ----------------------------------- main ----------------------------------- #

if __name__ == "__main__":
    key = jax.random.PRNGKey(0)
    B, C, H, W = 2, 4, 16, 16
    img = jax.random.uniform(key, (B, C, H, W), dtype=jnp.float32)

    # Deterministic affine parameters (module __init__ shapes: (B,), (B,2), (B,2)).
    angle = jnp.array([30.0, -15.0], jnp.float32)
    translation = jnp.array([[1.5, -2.0], [0.5, 3.0]], jnp.float32)
    scale = jnp.array([[1.1, 0.9], [0.8, 1.2]], jnp.float32)

    mod = Affine(angle=angle, translation=translation, scale_factor=scale)  # bf16 MXU path
    out = jax.block_until_ready(mod(img))
    assert out.shape == (B, C, H, W) and out.dtype == jnp.float32

    # Cross-check against a pure-JAX bilinear-warp reference.
    center = jnp.broadcast_to(jnp.array([(W - 1) / 2.0, (H - 1) / 2.0], jnp.float32), (B, 2))
    M = _get_affine_matrix2d(translation, center, scale, -angle)
    T = _invert_affine_2x3(M)
    ref = jax.block_until_ready(_warp_affine_reference(img, T))
    # bf16 path: tolerance accounts for bf16 quantization of src and the K-axis weights.
    assert jnp.allclose(out, ref, atol=2e-2), "bf16 warp mismatch vs reference"

    # f32 path: tight match vs reference.
    out_f32 = jax.block_until_ready(warp_affine_pallas(img, T, compute_dtype=jnp.float32))
    assert jnp.allclose(out_f32, ref, atol=1e-4), "f32 warp mismatch vs reference"

    # Multi-tile grid (TN=128 -> 2 inner steps) exercises the single-buffered src path.
    out_mt = jax.block_until_ready(
        warp_affine_pallas(img, T, tile_n=128, compute_dtype=jnp.float32))
    assert jnp.allclose(out_mt, ref, atol=1e-4), "multi-tile warp mismatch vs reference"

    # Non-square image: contraction over H (K=H>W) + forced P-chunking (Pc=8).
    B2, C2, H2, W2 = 1, 4, 24, 16
    img2 = jax.random.uniform(jax.random.PRNGKey(1), (B2, C2, H2, W2), dtype=jnp.float32)
    angle2 = jnp.array([45.0], jnp.float32)
    center2 = jnp.array([[(W2 - 1) / 2.0, (H2 - 1) / 2.0]], jnp.float32)
    M2 = _get_affine_matrix2d(jnp.zeros((1, 2), jnp.float32), center2,
                              jnp.ones((1, 2), jnp.float32), -angle2)
    T2 = _invert_affine_2x3(M2)
    ref2 = jax.block_until_ready(_warp_affine_reference(img2, T2))
    out2 = jax.block_until_ready(
        warp_affine_pallas(img2, T2, p_chunk=8, compute_dtype=jnp.float32))
    assert jnp.allclose(out2, ref2, atol=1e-4), "chunked/transposed warp mismatch"

    # Sanity: identity transform reproduces the input (f32 path exact, bf16 path ~quantized).
    ident_T = jnp.broadcast_to(jnp.array([[1.0, 0.0, 0.0], [0.0, 1.0, 0.0]], jnp.float32),
                               (B, 2, 3))
    ident_f32 = jax.block_until_ready(
        warp_affine_pallas(img, ident_T, compute_dtype=jnp.float32))
    assert jnp.allclose(ident_f32, img, atol=1e-5), "f32 identity warp mismatch"
    ident_bf16 = jax.block_until_ready(Affine(angle=jnp.zeros((B,), jnp.float32))(img))
    assert jnp.allclose(ident_bf16, img, atol=1e-2), "bf16 identity warp mismatch"

    print("KERNEL_OK")
</pallas_src>

<mosaic_0001>
module attributes {stable_mosaic.version = 11 : i64} {
  func.func @_warp_kernel(%arg0: i32, %arg1: i32, %arg2: memref<2x6xf32, #tpu.memory_space<smem>>, %arg3: memref<2x256xf32, #tpu.memory_space<vmem>>, %arg4: memref<1x64x16xbf16, #tpu.memory_space<vmem>>, %arg5: memref<1x4x256xf32, #tpu.memory_space<vmem>>) attributes {dimension_semantics = [#tpu.dimension_semantics<parallel>, #tpu.dimension_semantics<parallel>], iteration_bounds = array<i64: 2, 1>, scalar_prefetch = 1 : i64, scratch_operands = 0 : i64, tpu.core_type = #tpu.core_type<tc>, window_params = [{transform_indices = @transform_0, window_bounds = array<i64: 2, 256>}, {transform_indices = @transform_1, window_bounds = array<i64: 1, 64, 16>}, {transform_indices = @transform_2, window_bounds = array<i64: 1, 4, 256>}]} {
    %0 = arith.index_cast %arg0 : i32 to index
    %c0 = arith.constant 0 : index
    %1 = memref.load %arg2[%0, %c0] : memref<2x6xf32, #tpu.memory_space<smem>>
    %2 = arith.index_cast %arg0 : i32 to index
    %c1 = arith.constant 1 : index
    %3 = memref.load %arg2[%2, %c1] : memref<2x6xf32, #tpu.memory_space<smem>>
    %4 = arith.index_cast %arg0 : i32 to index
    %c2 = arith.constant 2 : index
    %5 = memref.load %arg2[%4, %c2] : memref<2x6xf32, #tpu.memory_space<smem>>
    %6 = arith.index_cast %arg0 : i32 to index
    %c3 = arith.constant 3 : index
    %7 = memref.load %arg2[%6, %c3] : memref<2x6xf32, #tpu.memory_space<smem>>
    %8 = arith.index_cast %arg0 : i32 to index
    %c4 = arith.constant 4 : index
    %9 = memref.load %arg2[%8, %c4] : memref<2x6xf32, #tpu.memory_space<smem>>
    %10 = arith.index_cast %arg0 : i32 to index
    %c5 = arith.constant 5 : index
    %11 = memref.load %arg2[%10, %c5] : memref<2x6xf32, #tpu.memory_space<smem>>
    %c0_0 = arith.constant 0 : index
    %c0_1 = arith.constant 0 : index
    %12 = vector.load %arg3[%c0_0, %c0_1] : memref<2x256xf32, #tpu.memory_space<vmem>>, vector<1x256xf32>
    %c1_2 = arith.constant 1 : index
    %c0_3 = arith.constant 0 : index
    %13 = vector.load %arg3[%c1_2, %c0_3] : memref<2x256xf32, #tpu.memory_space<vmem>>, vector<1x256xf32>
    %14 = vector.broadcast %1 : f32 to vector<1x256xf32>
    %15 = arith.mulf %14, %12 : vector<1x256xf32>
    %16 = vector.broadcast %3 : f32 to vector<1x256xf32>
    %17 = arith.mulf %16, %13 : vector<1x256xf32>
    %18 = arith.addf %15, %17 : vector<1x256xf32>
    %19 = vector.broadcast %5 : f32 to vector<1x256xf32>
    %20 = arith.addf %18, %19 : vector<1x256xf32>
    %21 = vector.broadcast %7 : f32 to vector<1x256xf32>
    %22 = arith.mulf %21, %12 : vector<1x256xf32>
    %23 = vector.broadcast %9 : f32 to vector<1x256xf32>
    %24 = arith.mulf %23, %13 : vector<1x256xf32>
    %25 = arith.addf %22, %24 : vector<1x256xf32>
    %26 = vector.broadcast %11 : f32 to vector<1x256xf32>
    %27 = arith.addf %25, %26 : vector<1x256xf32>
    %28 = tpu.iota {dimensions = array<i32: 0>} : vector<16x256xi32>
    %29 = arith.sitofp %28 : vector<16x256xi32> to vector<16x256xf32>
    %30 = tpu.iota {dimensions = array<i32: 0>} : vector<16x256xi32>
    %31 = arith.sitofp %30 : vector<16x256xi32> to vector<16x256xf32>
    %32 = vector.broadcast %20 : vector<1x256xf32> to vector<16x256xf32>
    %33 = arith.subf %29, %32 : vector<16x256xf32>
    %34 = math.absf %33 : vector<16x256xf32>
    %cst = arith.constant 1.000000e+00 : f32
    %35 = vector.broadcast %cst : f32 to vector<16x256xf32>
    %36 = arith.subf %35, %34 : vector<16x256xf32>
    %cst_4 = arith.constant 0.000000e+00 : f32
    %37 = vector.broadcast %cst_4 : f32 to vector<16x256xf32>
    %38 = arith.maximumf %36, %37 : vector<16x256xf32>
    %39 = arith.truncf %38 : vector<16x256xf32> to vector<16x256xbf16>
    %40 = vector.broadcast %27 : vector<1x256xf32> to vector<16x256xf32>
    %41 = arith.subf %31, %40 : vector<16x256xf32>
    %42 = math.absf %41 : vector<16x256xf32>
    %cst_5 = arith.constant 1.000000e+00 : f32
    %43 = vector.broadcast %cst_5 : f32 to vector<16x256xf32>
    %44 = arith.subf %43, %42 : vector<16x256xf32>
    %cst_6 = arith.constant 0.000000e+00 : f32
    %45 = vector.broadcast %cst_6 : f32 to vector<16x256xf32>
    %46 = arith.maximumf %44, %45 : vector<16x256xf32>
    %cst_7 = arith.constant 0.000000e+00 : f32
    %47 = vector.broadcast %cst_7 : f32 to vector<4x256xf32>
    %c0_8 = arith.constant 0 : index
    %c0_9 = arith.constant 0 : index
    %c0_10 = arith.constant 0 : index
    %48 = vector.load %arg4[%c0_8, %c0_9, %c0_10] : memref<1x64x16xbf16, #tpu.memory_space<vmem>>, vector<1x64x16xbf16>
    %49 = vector.shape_cast %48 : vector<1x64x16xbf16> to vector<64x16xbf16>
    %cst_11 = arith.constant dense<0.000000e+00> : vector<64x256xf32>
    %50 = tpu.matmul %49, %39, %cst_11 {dimension_numbers = #tpu.dot_dimension_numbers<[1], [0], [0], [1], [0, 0, 1, 1], [], []>} : vector<64x16xbf16>, vector<16x256xbf16>, vector<64x256xf32> -> vector<64x256xf32>
    %51 = vector.shape_cast %50 : vector<64x256xf32> to vector<16x4x256xf32>
    %52 = vector.shape_cast %46 : vector<16x256xf32> to vector<16x1x256xf32>
    %53 = vector.broadcast %52 : vector<16x1x256xf32> to vector<16x4x256xf32>
    %54 = arith.mulf %51, %53 : vector<16x4x256xf32>
    %cst_12 = arith.constant dense<0.000000e+00> : vector<4x256xf32>
    %55 = vector.multi_reduction <add>, %54, %cst_12 [0] : vector<16x4x256xf32> to vector<4x256xf32>
    %56 = arith.addf %47, %55 : vector<4x256xf32>
    %c0_13 = arith.constant 0 : index
    %c0_14 = arith.constant 0 : index
    %c0_15 = arith.constant 0 : index
    %57 = vector.load %arg5[%c0_13, %c0_14, %c0_15] : memref<1x4x256xf32, #tpu.memory_space<vmem>>, vector<1x4x256xf32>
    %58 = vector.shape_cast %57 : vector<1x4x256xf32> to vector<4x256xf32>
    %59 = vector.shape_cast %56 : vector<4x256xf32> to vector<1x4x256xf32>
    tpu.vector_store %arg5[%c0_13, %c0_14, %c0_15], %59 {strides = array<i32>} : memref<1x4x256xf32, #tpu.memory_space<vmem>>, vector<1x4x256xf32>,
    return
  }
  func.func @transform_0(%arg0: i32, %arg1: i32, %arg2: memref<2x6xf32, #tpu.memory_space<smem>>) -> (i32, i32) {
    %c0_i32 = arith.constant 0 : i32
    %c0_i32_0 = arith.constant 0 : i32
    return %c0_i32, %arg1 : i32, i32
  }
  func.func @transform_1(%arg0: i32, %arg1: i32, %arg2: memref<2x6xf32, #tpu.memory_space<smem>>) -> (i32, i32, i32) {
    %c0_i32 = arith.constant 0 : i32
    %c0_i32_0 = arith.constant 0 : i32
    %c0_i32_1 = arith.constant 0 : i32
    return %arg0, %c0_i32, %c0_i32_0 : i32, i32, i32
  }
  func.func @transform_2(%arg0: i32, %arg1: i32, %arg2: memref<2x6xf32, #tpu.memory_space<smem>>) -> (i32, i32, i32) {
    %c0_i32 = arith.constant 0 : i32
    %c0_i32_0 = arith.constant 0 : i32
    return %arg0, %c0_i32, %arg1 : i32, i32, i32
  }
}

</mosaic_0001>

<bundles_post_ra>
// kernel: tpu_custom_call.1
= control target key start
LH: loop header
LB: loop body
LE: loop exit
PB: predicated region body
PF: predicated region fallthrough
CT: control target
= control target key end

     0   :  { %s1415_s0 = inlined_call_operand.vmem [shape: f32[2,6], index: 0, kind: input, shape index: {}]   ;;  %s1416_s1 = inlined_call_operand.vmem [shape: f32[2,256], index: 1, kind: input, shape index: {}]   ;;  %s1417_s2 = inlined_call_operand.vmem [shape: bf16[2,64,16], index: 2, kind: input, shape index: {}]   ;;  %s1418_s3 = inlined_call_operand.hbm [shape: f32[2,4,256], index: 3, kind: output, shape index: {}]  }
   0x1   :  { %s8_s14 = sshll.u32 %s1415_s0, 4  ;;  %s9_s14 = int_to_ptr.vmem [resolvable:$true] %s8_s14 }
   0x2   :  { %s1029_s15 = scalar_lea.vmem %s9_s14, 32  ;;  %p1034_p1 = scmp.lt.s32.totalorder %s9_s14, %s9_s14 }
   0x3   :  { %p1030_p0 = scmp.ne.s32.totalorder %s9_s14, %s1029_s15  ;;  %p1035_p2 = scmp.lt.s32.totalorder %s1029_s15, %s1029_s15 }
   0x5   :  { %p1036_p3 = por %p1035_p2, %p1034_p1 }
   0x7   :  { %p1037_p4 = pnand %p1036_p3, %p1030_p0 }
   0x9   :  { %1040 = shalt.err (!%p1037_p4)  }
   0xa   :  { %s1121_s16 = smov [#allocation3]  }
   0xb   :  { %11 = dma.vmem_to_smem %s9_s14, 32, %s1121_s16, [#allocation2] }
   0xc   :  { %1091 = dma.done.wait [#allocation2], 32 }
   0xd   :  { %1092 = vsyncadd [#allocation2], 4294967264 }
   0xe   :  { %13 = sfence }
   0xf   :  { %14 = vsyncpa [#allocation5], 0 }
  0x10   :  { %16 = vsyncpa [#allocation5 + $0x1], 0  ;;  %s1148_s17 = smov 0   ;;  %s1150_s18 = smov 0  }
  0x11   :  { %s1152_s0 = smov 0   ;;  %s1154_s19 = smov 0  }
  0x12   :  { %s1156_s20 = smov 0   ;;  %s1158_s21 = smov 0  }
  0x13 LB: > { %s939_s22 = sadd.s32 4294967295, %s1119_s21   ;;  %s940_s23 = sadd.s32 4294967294, %s1119_s21   ;;  %s1119_s21 = sphi %s1158_s21, %s22_s21   ;;  %s1115_s20 = sphi %s1156_s20, %s1425_s20   ;;  %s1111_s19 = sphi %s1154_s19, %s1424_s19   ;;  %s1107_s0 = sphi %s1152_s0, %s1423_s0   ;;  %s1103_s18 = sphi %s1150_s18, %s1422_s18   ;;  %s1099_s17 = sphi %s1148_s17, %s1421_s17  }
  0x14   : > { %s34_s24 = sadd.s32 1, %s1115_s20  ;;  %s95_s25 = sadd.s32 1, %s1107_s0 }
  0x15   : > { %p36_p5 = scmp.ge.s32.totalorder %s34_s24, 2  ;;  %p105_p6 = scmp.ne.s32.totalorder %s1107_s0, %s1103_s18 }
  0x16   : > { %p106_p7 = scmp.eq.s32.totalorder %s939_s22, 1  ;;  %p111_p8 = scmp.ne.s32.totalorder %s1103_s18, %s1099_s17 }
  0x17   : > { %s1427_s24 = smov (%p36_p5, %s34_s24), 0  ;;  %p112_p10 = scmp.eq.s32.totalorder %s940_s23, 1 }
  0x18   : > { %p1188_p9 = por %p106_p7, %p105_p6  ;;  %s90_s27 = ssub.s32 %s1115_s20, %s1427_s24 }
  0x19   : > { %p944_p11 = scmp.ge.s32.totalorder %s1119_s21, 1  ;;  %p93_p12 = scmp.eq.s32.totalorder %s90_s27, 0 }
  0x1a   : > { %p1195_p13 = por %p112_p10, %p111_p8  ;;  %p147_p0 = scmp.lt.s32.totalorder %s1119_s21, 3 }
  0x1b   : > { %s1201_s29 = scalar_select %p93_p12, %s1107_s0, %s95_s25  }
  0x1c   : > { %p148_p1 = pnand %p944_p11, %p147_p0 }
  0x1d   : > { %s1204_s30 = sshll.u32 (!%p148_p1), %s1111_s19, 7  ;;  %p180_p2 = scmp.lt.s32.totalorder (!%p148_p1), %s1111_s19, 1 }
  0x1e   : > { %151 = sbr.rel (%p148_p1) target bundleno = 311 (0x137), region = 28  ;;  %s188_s4 = sld [smem:[#allocation3 + %s1204_s30]] (!%p148_p1) }
  0x1f   : > { %s189_s5 = sadd.s32 (!%p148_p1), 1, %s1204_s30  ;;  %s191_s7 = sadd.s32 (!%p148_p1), 2, %s1204_s30 }
  0x20   : > { %s190_s6 = sld [smem:[#allocation3 + %s189_s5]] (!%p148_p1)  ;;  %s193_s9 = sadd.s32 (!%p148_p1), 3, %s1204_s30 }
  0x21   : > { %s192_s8 = sld [smem:[#allocation3 + %s191_s7]] (!%p148_p1)  ;;  %s195_s11 = sadd.s32 (!%p148_p1), 4, %s1204_s30 }
  0x22   : > { %s194_s10 = sld [smem:[#allocation3 + %s193_s9]] (!%p148_p1)  ;;  %s171_s5 = sand.u32 (!%p148_p1), 1, %s1103_s18  }
  0x23   : > { %v216_v0 = vlaneseq  ;;  %v1122_v1 = vmov 0   ;;  %s196_s12 = sld [smem:[#allocation3 + %s195_s11]]  ;;  %v199_v2 = vld [vmem:[%s1416_s1] ss:$2 sm:$0x3]  ;;  %s1429_s19 = smov (!%p180_p2, %s1111_s19), 1 }
  0x24   : > { %350 = vmatprep.mubr.bf16.mxu0 %v1122_v1  ;;  %370 = vmatprep.mubr.bf16.mxu1 %v1122_v1  ;;  %v949_v4 = vld [vmem:[%s1416_s1 + $0x1] ss:$2 sm:$0x3]  ;;  %v202_v5 = vstv %s188_s4  ;;  %s963_s22 = sshll.u32 %s1429_s19, 5  ;;  %vm305_vm0 = vcmask 130048   ;;  %s197_s19 = sadd.s32 5, %s1204_s30 }
  0x25   : > { %v1214_v3 = vshrl.u32 %v216_v0, 7  ;;  %v203_v6 = vmul.f32 %v202_v5, %v199_v2  ;;  %s1231_s27 = scalar_lea.vmem %s1417_s2, %s963_s22  ;;  %s198_s4 = sld [smem:[#allocation3 + %s197_s19]]  ;;  %v1123_v50 = vmov 1966171168   ;;  %vm767_vm1 = vcmask 1043456  }
  0x26   : > { %v204_v7 = vstv %s190_s6  ;;  %v1025_v42 = vld [vmem:[%s1231_s27] sm:$0xff]   ;;  %v1027_v43 = vld [vmem:[%s1231_s27 + $0x10] sm:$0xff]   ;;  %v1026_v44 = vld [vmem:[%s1231_s27 + $0x8] sm:$0xff]   ;;  %v446_v51 = vunpack.c.l.s4 %v1123_v50  ;;  %s945_s6 = sshll.u32 %s171_s5, 3  ;;  %s852_s11 = scalar_lea.hbm %s1418_s3, %s1204_s30 }
  0x27   : > { %v205_v8 = vmul.f32 %v949_v4, %v204_v7  ;;  %v218_v9 = vadd.s32 8, %v1214_v3  ;;  %v207_v10 = vstv %s192_s8  ;;  %v1223_v12 = vsub.s32 0, %v1214_v3  ;;  %v1028_v45 = vld [vmem:[%s1231_s27 + $0x18] sm:$0xff]   ;;  %s173_s7 = scalar_lea.vmem [#allocation4], %s945_s6  ;;  %s1124_s14 = smov [#allocation4]  }
  0x28   : > { %v209_v11 = vstv %s194_s10  ;;  %v1226_v16 = vsub.s32 1, %v1214_v3  ;;  %v219_v19 = vcvt.s32.f32 %v1214_v3  ;;  %v447_v54 = vunpack.c.0.s8 %v446_v51  ;;  %s854_s8 = sshll.u32 %s173_s7, 4  ;;  %s1045_s15 = sshll.u32 %s1124_s14, 4  ;;  %s855_s8 = int_to_ptr.vmem [resolvable:$true] %s854_s8  ;;  %s1046_s15 = int_to_ptr.vmem [resolvable:$false] %s1045_s15 }
  0x29   : > { %v206_v13 = vadd.f32 %v205_v8, %v203_v6  ;;  %v210_v14 = vmul.f32 %v209_v11, %v199_v2  ;;  %v211_v15 = vstv %s196_s12  ;;  %v1234_v20 = vcvt.s32.f32 %v218_v9  ;;  %s838_s12 = scalar_lea.sflag [#allocation5], %s171_s5  ;;  %s1041_s13 = scalar_lea.vmem %s855_s8, 128 }
  0x2a   : > { %v212_v17 = vmul.f32 %v949_v4, %v211_v15  ;;  %v450_v59 = vsub.s32 %v447_v54, %v1214_v3  ;;  %p1042_p3 = scmp.ne.s32.totalorder %s855_s8, %s1041_s13  ;;  %s1047_s16 = scalar_lea.vmem %s1046_s15, 256 }
  0x2b   : > { %v208_v18 = vadd.f32 %v207_v10, %v206_v13  ;;  %v214_v46 = vstv %s198_s4  ;;  %p1048_p6 = scmp.lt.s32.totalorder %s855_s8, %s1046_s15  ;;  %p1049_p7 = scmp.lt.s32.totalorder %s1047_s16, %s1041_s13 }
  0x2c   : > { %v213_v21 = vadd.f32 %v212_v17, %v210_v14  ;;  %p1043_p4 = pnand %p1042_p3, %p1188_p9 }
  0x2d   : > { %v229_v22 = vrot.slane %v208_v18, %v1226_v16  ;;  %v225_v23 = vrot.slane %v208_v18, %v1223_v12  ;;  %p1050_p8 = por %p1049_p7, %p1048_p6 }
  0x2e   : > { %v215_v47 = vadd.f32 %v214_v46, %v213_v21  ;;  %p1044_p5 = pneg %p1043_p4 }
  0x2f   : > { %v233_v24 = vsub.f32 %v219_v19, %v229_v22  ;;  %v235_v25 = vsub.f32 %v1234_v20, %v229_v22  ;;  %v232_v26 = vsub.f32 %v219_v19, %v225_v23  ;;  %v234_v27 = vsub.f32 %v1234_v20, %v225_v23 }
  0x30   : > { %v254_v48 = vrot.slane %v215_v47, %v1223_v12  ;;  %v258_v49 = vrot.slane %v215_v47, %v1226_v16  ;;  %p1051_p10 = pnand %p1050_p8, %p1044_p5 }
  0x31   : > { %v237_v28 = vand.u32 2147483647, %v233_v24  ;;  %v239_v29 = vand.u32 2147483647, %v235_v25  ;;  %v236_v30 = vand.u32 2147483647, %v232_v26 }
  0x32   : > { %v238_v31 = vand.u32 2147483647, %v234_v27  ;;  %v261_v52 = vsub.f32 %v219_v19, %v254_v48  ;;  %v262_v53 = vsub.f32 %v219_v19, %v258_v49  ;;  %v264_v2 = vsub.f32 %v1234_v20, %v258_v49 }
  0x33   : > { %v241_v32 = vsub.f32 1.0, %v237_v28  ;;  %v243_v33 = vsub.f32 1.0, %v239_v29  ;;  %v240_v34 = vsub.f32 1.0, %v236_v30 }
  0x34   : > { %v242_v35 = vsub.f32 1.0, %v238_v31  ;;  %v265_v55 = vand.u32 2147483647, %v261_v52  ;;  %v266_v56 = vand.u32 2147483647, %v262_v53 }
  0x35   : > { %v245_v36 = vmax.f32 %v241_v32, 0.0  ;;  %v247_v37 = vmax.f32 %v243_v33, 0.0  ;;  %v244_v38 = vmax.f32 %v240_v34, 0.0  ;;  %v268_v7 = vand.u32 2147483647, %v264_v2 }
  0x36   : > { %v246_v39 = vmax.f32 %v242_v35, 0.0  ;;  %v269_v57 = vsub.f32 1.0, %v265_v55  ;;  %v270_v58 = vsub.f32 1.0, %v266_v56 }
  0x37   : > { %v249_v40 = vpack.c.bf16 %v247_v37, %v245_v36  ;;  %v272_v10 = vsub.f32 1.0, %v268_v7 }
  0x38   : > { %v248_v41 = vpack.c.bf16 %v246_v39, %v244_v38  ;;  %v273_v60 = vmax.f32 %v269_v57, 0.0  ;;  %v274_v61 = vmax.f32 %v270_v58, 0.0 }
  0x39   : > { %332 = vmatprep.subr.bf16.mxu0 %v249_v40  ;;  %965 = vmatprep.subr.bf16.mxu1 %v249_v40  ;;  %v276_v14 = vmax.f32 %v272_v10, 0.0 }
  0x3a   : > { %333 = vmatpush1.bf16.msra.mxu0 %v248_v41  ;;  %966 = vmatpush1.bf16.msra.mxu1 %v248_v41  ;;  %v443_v62 = vcombine.low %v273_v60, %v274_v61  ;;  %v444_v8 = vcombine.high %v273_v60, %v274_v61 }
  0x3c   : > { %v451_v63 = vrot.slane %v443_v62, %v450_v59  ;;  %v458_v11 = vrot.slane %v444_v8, %v450_v59 }
  0x3d   : > { %954 = vmatmul.mubr.msk.bf16.vlgmr.msra.gmra.mxu0 %vm305_vm0, %v1025_v42  ;;  %956 = vmatmul.mubr.msk.bf16.vlgmr.msra.gmra.mxu1 %vm305_vm0, %v1027_v43 }
  0x3e   : > { %360 = vmatprep.mubr.bf16.mxu0 %v1122_v1  ;;  %380 = vmatprep.mubr.bf16.mxu1 %v1122_v1  ;;  %v459_v0 = vcombine.high %v451_v63, %v451_v63  ;;  %v263_v1 = vsub.f32 %v1234_v20, %v254_v48  ;;  %v467_v4 = vrot.slane %v451_v63, %v450_v59 }
  0x3f   : > { %v460_v3 = vcombine.high %v458_v11, %v458_v11  ;;  %v474_v17 = vrot.slane %v458_v11, %v450_v59 }
  0x40   : > { %v481_v5 = vrot.slane %v459_v0, %v450_v59  ;;  %v267_v6 = vand.u32 2147483647, %v263_v1  ;;  %v546_v28 = vrot.slane %v467_v4, %v1223_v12  ;;  %v550_v29 = vrot.slane %v467_v4, %v1226_v16 }
  0x41   : > { %v488_v18 = vrot.slane %v460_v3, %v450_v59  ;;  %v489_v32 = vcombine.high %v467_v4, %v467_v4  ;;  %v490_v34 = vcombine.high %v474_v17, %v474_v17  ;;  %v578_v42 = vrot.slane %v474_v17, %v1223_v12 }
  0x42   : > { %v271_v9 = vsub.f32 1.0, %v267_v6  ;;  %v554_v30 = vrot.slane %v481_v5, %v1223_v12  ;;  %v558_v31 = vrot.slane %v481_v5, %v1226_v16  ;;  %v491_v33 = vcombine.high %v481_v5, %v481_v5 }
  0x43   : > { %v671_v35 = vcombine.low %v546_v28, %v550_v29  ;;  %v492_v36 = vcombine.high %v488_v18, %v488_v18  ;;  %v562_v38 = vrot.slane %v489_v32, %v1223_v12  ;;  %v566_v39 = vrot.slane %v489_v32, %v1226_v16 }
  0x44   : > { %v275_v13 = vmax.f32 %v271_v9, 0.0  ;;  %v672_v37 = vcombine.low %v554_v30, %v558_v31  ;;  %v570_v40 = vrot.slane %v491_v33, %v1223_v12  ;;  %v574_v41 = vrot.slane %v491_v33, %v1226_v16 }
  0x45   : > { %955 = vmatmul.mubr.msk.bf16.gmra.mxu0 %vm305_vm0, %v1026_v44  ;;  %957 = vmatmul.mubr.msk.bf16.gmra.mxu1 %vm305_vm0, %v1028_v45  ;;  %v582_v44 = vrot.slane %v474_v17, %v1226_v16  ;;  %v586_v45 = vrot.slane %v488_v18, %v1223_v12  ;;  %v590_v46 = vrot.slane %v488_v18, %v1226_v16 }
  0x46   : > { %v493_v15 = vcombine.low %v275_v13, %v276_v14  ;;  %v494_v24 = vcombine.high %v275_v13, %v276_v14  ;;  %v594_v47 = vrot.slane %v490_v34, %v1223_v12  ;;  %v598_v50 = vrot.slane %v490_v34, %v1226_v16 }
  0x47   : > { %v602_v51 = vrot.slane %v492_v36, %v1223_v12  ;;  %v606_v52 = vrot.slane %v492_v36, %v1226_v16  ;;  %v674_v60 = vcombine.low %v570_v40, %v574_v41  ;;  %v675_v2 = vcombine.low %v578_v42, %v582_v44 }
  0x48   : > { %v501_v19 = vrot.slane %v493_v15, %v450_v59  ;;  %v508_v20 = vrot.slane %v494_v24, %v450_v59  ;;  %v676_v4 = vcombine.low %v586_v45, %v590_v46  ;;  %v1280_v6 = vcombine.low %v594_v47, %v598_v50 }
  0x49   : > { %v1282_v7 = vcombine.low %v602_v51, %v606_v52 }
  0x4a   : > { %v509_v21 = vcombine.high %v501_v19, %v501_v19  ;;  %v517_v22 = vrot.slane %v501_v19, %v450_v59  ;;  %v510_v25 = vcombine.high %v508_v20, %v508_v20  ;;  %v1250_v26 = vrot.slane %v508_v20, %v450_v59 }
  0x4c   : > { %v531_v23 = vrot.slane %v509_v21, %v450_v59  ;;  %v1252_v27 = vrot.slane %v510_v25, %v450_v59  ;;  %v539_v43 = vcombine.high %v517_v22, %v517_v22  ;;  %v610_v54 = vrot.slane %v517_v22, %v1223_v12 }
  0x4d   : > { %v614_v55 = vrot.slane %v517_v22, %v1226_v16  ;;  %v673_v59 = vcombine.low %v562_v38, %v566_v39  ;;  %v642_v18 = vrot.slane %v1250_v26, %v1223_v12  ;;  %v646_v19 = vrot.slane %v1250_v26, %v1226_v16 }
  0x4e   : > { %v541_v53 = vcombine.high %v531_v23, %v531_v23  ;;  %v618_v56 = vrot.slane %v531_v23, %v1223_v12  ;;  %v622_v57 = vrot.slane %v531_v23, %v1226_v16  ;;  %v626_v62 = vrot.slane %v539_v43, %v1223_v12 }
  0x4f   : > { %v630_v63 = vrot.slane %v539_v43, %v1226_v16  ;;  %v679_v14 = vcombine.low %v610_v54, %v614_v55  ;;  %v1298_v21 = vcombine.high %v1250_v26, %v1250_v26  ;;  %v650_v26 = vrot.slane %v1252_v27, %v1223_v12 }
  0x50   : > { %v634_v9 = vrot.slane %v541_v53, %v1223_v12  ;;  %v638_v10 = vrot.slane %v541_v53, %v1226_v16  ;;  %v1288_v3 = vcombine.low %v618_v56, %v622_v57  ;;  %v1314_v40 = vcombine.high %v1252_v27, %v1252_v27 }
  0x51   : > { %v1290_v17 = vcombine.low %v626_v62, %v630_v63  ;;  %v1318_v44 = vcombine.low %v642_v18, %v646_v19  ;;  %v658_v45 = vrot.slane %v1298_v21, %v1223_v12  ;;  %v662_v51 = vrot.slane %v1298_v21, %v1226_v16 }
  0x52   : > { %v1304_v32 = vcombine.low %v634_v9, %v638_v10 }
  0xfd   : > { %v352_v48 = vpop.f32.mrf.mxu0  ;;  %v1267_v49 = vpop.f32.mrf.mxu1 }
  0xff   : > { %v354_v58 = vpop.f32.mrf.mxu0  ;;  %v1276_v61 = vpop.f32.mrf.mxu1 }
 0x100   : > { %v407_v0 = vcombine.low %v352_v48, %v354_v58  ;;  %v408_v1 = vcombine.high %v352_v48, %v354_v58  ;;  %v415_v54 = vcombine.low %v1267_v49, %v1276_v61  ;;  %v416_v57 = vcombine.high %v1267_v49, %v1276_v61 }
 0x101   : > { %v356_v5 = vpop.f32.mrf.mxu0  ;;  %v1284_v8 = vpop.f32.mrf.mxu1 }
 0x102   : > { %v703_v11 = vmul.f32 %v671_v35, %v407_v0  ;;  %v704_v13 = vmul.f32 %v672_v37, %v408_v1  ;;  %v654_v35 = vrot.slane %v1252_v27, %v1226_v16 }
 0x103   : > { %v358_v15 = vpop.f32.mrf.mxu0  ;;  %v1302_v25 = vpop.f32.mrf.mxu1 }
 0x104   : > { %v735_v22 = vcombine.high %v703_v11, %v703_v11  ;;  %v736_v23 = vcombine.high %v704_v13, %v704_v13  ;;  %v768_v24 = vsel %vm767_vm1, %v703_v11, 0.0  ;;  %v769_v20 = vsel %vm767_vm1, %v704_v13, 0.0 }
 0x105   : > { %v770_v28 = vadd.f32 %v769_v20, %v768_v24  ;;  %v409_v29 = vcombine.low %v356_v5, %v358_v15  ;;  %v410_v30 = vcombine.high %v356_v5, %v358_v15  ;;  %v362_v31 = vpop.f32.mrf.mxu0  ;;  %v1316_v43 = vpop.f32.mrf.mxu1  ;;  %v711_v15 = vmul.f32 %v679_v14, %v415_v54 }
 0x106   : > { %v799_v33 = vsel %vm767_vm1, %v735_v22, 0.0  ;;  %v800_v34 = vsel %vm767_vm1, %v736_v23, 0.0  ;;  %v417_v19 = vcombine.low %v1284_v8, %v1302_v25  ;;  %v712_v23 = vmul.f32 %v1288_v3, %v416_v57 }
 0x107   : > { %v801_v36 = vadd.f32 %v800_v34, %v799_v33  ;;  %v705_v37 = vmul.f32 %v673_v59, %v409_v29  ;;  %v706_v38 = vmul.f32 %v674_v60, %v410_v30  ;;  %v364_v39 = vpop.f32.mrf.mxu0  ;;  %v684_v59 = vcombine.low %v650_v26, %v654_v35  ;;  %v384_v1 = vpop.f32.mrf.mxu1 }
 0x108   : > { %v411_v41 = vcombine.low %v362_v31, %v364_v39  ;;  %v412_v42 = vcombine.high %v362_v31, %v364_v39  ;;  %v418_v24 = vcombine.high %v1284_v8, %v1302_v25  ;;  %v743_v31 = vcombine.high %v711_v15, %v711_v15 }
 0x109   : > { %v737_v46 = vcombine.high %v705_v37, %v705_v37  ;;  %v738_v47 = vcombine.high %v706_v38, %v706_v38  ;;  %v771_v48 = vsel %vm767_vm1, %v705_v37, 0.0  ;;  %v366_v50 = vpop.f32.mrf.mxu0  ;;  %v773_v55 = vsel %vm767_vm1, %v706_v38, 0.0  ;;  %v386_v20 = vpop.f32.mrf.mxu1 }
 0x10a   : > { %v772_v52 = vadd.f32 %v771_v48, %v770_v28  ;;  %v707_v27 = vmul.f32 %v675_v2, %v411_v41  ;;  %v708_v53 = vmul.f32 %v676_v4, %v412_v42  ;;  %v666_v33 = vrot.slane %v1314_v40, %v1223_v12 }
 0x10b   : > { %v802_v56 = vsel %vm767_vm1, %v737_v46, 0.0  ;;  %v368_v58 = vpop.f32.mrf.mxu0  ;;  %v804_v63 = vsel %vm767_vm1, %v738_v47, 0.0  ;;  %v713_v26 = vmul.f32 %v1290_v17, %v417_v19  ;;  %v419_v8 = vcombine.low %v1316_v43, %v384_v1  ;;  %v388_v37 = vpop.f32.mrf.mxu1 }
 0x10c   : > { %v774_v60 = vadd.f32 %v773_v55, %v772_v52  ;;  %v803_v62 = vadd.f32 %v802_v56, %v801_v36  ;;  %v739_v0 = vcombine.high %v707_v27, %v707_v27  ;;  %v740_v2 = vcombine.high %v708_v53, %v708_v53 }
 0x10d   : > { %v775_v4 = vsel %vm767_vm1, %v707_v27, 0.0  ;;  %v413_v5 = vcombine.low %v366_v50, %v368_v58  ;;  %v414_v9 = vcombine.high %v366_v50, %v368_v58  ;;  %v777_v49 = vsel %vm767_vm1, %v708_v53, 0.0 }
 0x10e   : > { %v805_v10 = vadd.f32 %v804_v63, %v803_v62  ;;  %v776_v11 = vadd.f32 %v775_v4, %v774_v60  ;;  %v806_v13 = vsel %vm767_vm1, %v739_v0, 0.0  ;;  %v808_v28 = vsel %vm767_vm1, %v740_v2, 0.0 }
 0x10f   : > { %v709_v61 = vmul.f32 %v1280_v6, %v413_v5  ;;  %v710_v18 = vmul.f32 %v1282_v7, %v414_v9  ;;  %v744_v25 = vcombine.high %v712_v23, %v712_v23  ;;  %v670_v38 = vrot.slane %v1314_v40, %v1226_v16 }
 0x110   : > { %v778_v21 = vadd.f32 %v777_v49, %v776_v11  ;;  %v807_v22 = vadd.f32 %v806_v13, %v805_v10  ;;  %v783_v39 = vsel %vm767_vm1, %v711_v15, 0.0  ;;  %v714_v12 = vmul.f32 %v1304_v32, %v418_v24 }
 0x111   : > { %v741_v14 = vcombine.high %v709_v61, %v709_v61  ;;  %v742_v29 = vcombine.high %v710_v18, %v710_v18  ;;  %v779_v30 = vsel %vm767_vm1, %v709_v61, 0.0  ;;  %v781_v34 = vsel %vm767_vm1, %v710_v18, 0.0 }
 0x112   : > { %v809_v6 = vadd.f32 %v808_v28, %v807_v22  ;;  %v780_v7 = vadd.f32 %v779_v30, %v778_v21  ;;  %v420_v42 = vcombine.high %v1316_v43, %v384_v1  ;;  %v785_v46 = vsel %vm767_vm1, %v712_v23, 0.0 }
 0x113   : > { %v810_v3 = vsel %vm767_vm1, %v741_v14, 0.0  ;;  %v812_v41 = vsel %vm767_vm1, %v742_v29, 0.0  ;;  %v685_v48 = vcombine.low %v658_v45, %v662_v51  ;;  %v814_v50 = vsel %vm767_vm1, %v743_v31, 0.0 }
 0x114   : > { %v782_v35 = vadd.f32 %v781_v34, %v780_v7  ;;  %v811_v36 = vadd.f32 %v810_v3, %v809_v6  ;;  %v745_v52 = vcombine.high %v713_v26, %v713_v26  ;;  %v715_v27 = vmul.f32 %v1318_v44, %v419_v8 }
 0x115   : > { %v421_v53 = vcombine.low %v386_v20, %v388_v37  ;;  %v816_v16 = vsel %vm767_vm1, %v744_v25, 0.0  ;;  %v686_v55 = vcombine.low %v666_v33, %v670_v38  ;;  %v746_v32 = vcombine.high %v714_v12, %v714_v12 }
 0x116   : > { %v784_v17 = vadd.f32 %v783_v39, %v782_v35  ;;  %v813_v47 = vadd.f32 %v812_v41, %v811_v36  ;;  %v787_v43 = vsel %vm767_vm1, %v713_v26, 0.0  ;;  %v716_v56 = vmul.f32 %v684_v59, %v420_v42 }
 0x117   : > { %v422_v57 = vcombine.high %v386_v20, %v388_v37  ;;  %v789_v45 = vsel %vm767_vm1, %v714_v12, 0.0  ;;  %v818_v51 = vsel %vm767_vm1, %v745_v52, 0.0  ;;  %v747_v44 = vcombine.high %v715_v27, %v715_v27 }
 0x118   : > { %v815_v40 = vadd.f32 %v814_v50, %v813_v47  ;;  %v786_v54 = vadd.f32 %v785_v46, %v784_v17  ;;  %v717_v62 = vmul.f32 %v685_v48, %v421_v53  ;;  %v820_v1 = vsel %vm767_vm1, %v746_v32, 0.0 }
 0x119   : > { %v748_v2 = vcombine.high %v716_v56, %v716_v56  ;;  %v791_v4 = vsel %vm767_vm1, %v715_v27, 0.0  ;;  %v718_v5 = vmul.f32 %v686_v55, %v422_v57  ;;  %v793_v10 = vsel %vm767_vm1, %v716_v56, 0.0 }
 0x11a   : > { %v788_v58 = vadd.f32 %v787_v43, %v786_v54  ;;  %v817_v60 = vadd.f32 %v816_v16, %v815_v40  ;;  %v822_v11 = vsel %vm767_vm1, %v747_v44, 0.0  ;;  %v749_v13 = vcombine.high %v717_v62, %v717_v62 }
 0x11b   : > { %v824_v61 = vsel %vm767_vm1, %v748_v2, 0.0  ;;  %v750_v18 = vcombine.high %v718_v5, %v718_v5  ;;  %v795_v19 = vsel %vm767_vm1, %v717_v62, 0.0  ;;  %v797_v23 = vsel %vm767_vm1, %v718_v5, 0.0 }
 0x11c   : > { %v790_v63 = vadd.f32 %v789_v45, %v788_v58  ;;  %v819_v0 = vadd.f32 %v818_v51, %v817_v60  ;;  %v826_v24 = vsel %vm767_vm1, %v749_v13, 0.0 }
 0x11d   : > { %v828_v14 = vsel %vm767_vm1, %v750_v18, 0.0 }
 0x11e   : > { %v821_v59 = vadd.f32 %v820_v1, %v819_v0  ;;  %v792_v9 = vadd.f32 %v791_v4, %v790_v63 }
 0x120   : > { %v794_v15 = vadd.f32 %v793_v10, %v792_v9  ;;  %v823_v49 = vadd.f32 %v822_v11, %v821_v59 }
 0x122   : > { %v825_v21 = vadd.f32 %v824_v61, %v823_v49  ;;  %v796_v22 = vadd.f32 %v795_v19, %v794_v15 }
 0x124   : > { %v798_v20 = vadd.f32 %v797_v23, %v796_v22  ;;  %v827_v28 = vadd.f32 %v826_v24, %v825_v21 }
 0x126   : > { %v829_v29 = vadd.f32 %v828_v14, %v827_v28 }
 0x128   : > { %v834_v30 = vcombine.low %v798_v20, %v829_v29 }
 0x12a   : > { %836 = vst [vmem:[%s173_s7] sm:$0xff] %v834_v30 }
 0x12b   : > { %1054 = shalt.err (!%p1051_p10)
}
 0x12c   : > { %s1055_s22 = scalar_lea.hbm %s852_s11, 128  ;;  %s1059_s25 = scalar_lea.hbm %s1418_s3, 256 }
 0x12d   : > { %p1056_p11 = scmp.ne.s32.totalorder %s852_s11, %s1055_s22  ;;  %p1060_p1 = scmp.lt.s32.totalorder %s852_s11, %s1418_s3 }
 0x12e   : > { %p1061_p2 = scmp.lt.s32.totalorder %s1059_s25, %s1055_s22 }
 0x12f   : > { %p1057_p12 = pnand %p1056_p11, %p1188_p9 }
 0x130   : > { %p1062_p3 = por %p1061_p2, %p1060_p1 }
 0x131   : > { %p1058_p0 = pneg %p1057_p12 }
 0x133   : > { %p1063_p4 = pnand %p1062_p3, %p1058_p0 }
 0x135   : > { %1066 = shalt.err (!%p1063_p4)
}
 0x136   : > { %967 = dma.vmem_to_hbm [thread:$0]  (%p1188_p9), %s855_s8, 128, %s852_s11, %s838_s12  }
 0x137 PF: > { %p973_p5 = scmp.ge.s32.totalorder %s1119_s21, 2  ;;  %s866_s4 = sand.u32 1, %s1099_s17  }
 0x138   : > { %s867_s5 = scalar_lea.sflag [#allocation5], %s866_s4 }
 0x139   : > { %p970_p6 = pnand %p973_p5, %p1195_p13 }
 0x13b   : > { %p971_p7 = pneg %p970_p6 }
 0x13d   : > { %1094 = dma.done.wait (%p971_p7), %s867_s5, 128  }
 0x13e   : > { %1096 = vsyncadd (%p971_p7), %s867_s5, 4294967168  ;;  %s22_s21 = sadd.s32 1, %s1119_s21   ;;  %s1421_s17 = smov %s1103_s18 }
 0x13f   : > { %p19_p8 = scmp.ge.s32.totalorder %s22_s21, 4   ;;  %s1422_s18 = smov %s1107_s0 }
 0x140   : > { %s1423_s0 = smov %s1201_s29  ;;  %s1424_s19 = smov %s1115_s20 }
 0x141   : > { %s1425_s20 = smov %s1427_s24  ;;  %21 = sbr.rel (!%p19_p8) target bundleno = 19 (0x13), region = 67 }
 0x146   :  { %872 = vsyncpa [#allocation5], 1 }
 0x147   :  { %874 = vsyncpa [#allocation5 + $0x1], 1 }

</bundles_post_ra>
